<compile_context>
chip_gen: v7x
topology: tpu7x:2x2x1
jax: 0.10.0
libtpu: 0.0.40
codegen_flags: <defaults>
</compile_context>

<pallas_src>
import functools

import jax
import jax.numpy as jnp
import numpy as np
from jax.experimental import pallas as pl
from jax.experimental.pallas import tpu as pltpu

LANES = 1024                        # packed-slab width (lane-dense, multiple of 128)
TARGET_BLOCK_BYTES = 2 * 1024 * 1024  # ~2 MiB per block ref (dtype-aware rows)
ROW_ALIGN = 32                      # second-minor alignment safe for f32 / bf16 / int8


def _round_up(x, m):
    return ((x + m - 1) // m) * m


def _ema_kernel(shadow_ref, new_ref, out_ref, *, mu):
    # Purely elementwise, HBM-bandwidth-bound.  Compute in f32, cast on store.
    s = shadow_ref[...].astype(jnp.float32)
    n = new_ref[...].astype(jnp.float32)
    out_ref[...] = (mu * s + (1.0 - mu) * n).astype(out_ref.dtype)


def _ema_pallas(shadow2d, new2d, mu, block_rows):
    rows, cols = shadow2d.shape
    assert rows % block_rows == 0 and cols == LANES
    spec = pl.BlockSpec((block_rows, cols), lambda i: (i, 0))
    return pl.pallas_call(
        functools.partial(_ema_kernel, mu=mu),
        out_shape=jax.ShapeDtypeStruct((rows, cols), shadow2d.dtype),
        grid=(rows // block_rows,),
        in_specs=[spec, spec],
        out_specs=spec,
        input_output_aliases={0: 0},  # shadow updated in place
        compiler_params=pltpu.CompilerParams(
            dimension_semantics=("parallel",)),
    )(shadow2d, new2d)


class EMA:
    """Pallas-TPU EMA of parameters (mirrors the PyTorch EMA module)."""

    def __init__(self, mu):
        self.mu = float(mu)
        self._shadow = None       # packed (rows, LANES) slab, persistent state
        self._step_fn = None
        self._unpack_fn = None

    # ---- PyTorch `register(params)` equivalent -----------------------------
    def register(self, params):
        params = [jnp.asarray(p) for p in params]
        self._shapes = [p.shape for p in params]
        self._sizes = [int(np.prod(p.shape)) for p in params]
        self._dtype = params[0].dtype
        assert all(p.dtype == self._dtype for p in params), "uniform dtype expected"

        offs = np.cumsum([0] + self._sizes)
        self._offsets = [int(o) for o in offs[:-1]]
        self._total = int(offs[-1])

        itemsize = jnp.dtype(self._dtype).itemsize
        max_block_rows = max(ROW_ALIGN,
                             TARGET_BLOCK_BYTES // (LANES * itemsize))
        max_block_rows = _round_up(max_block_rows, ROW_ALIGN)

        rows_needed = _round_up(max(pl.cdiv(self._total, LANES), 1), ROW_ALIGN)
        self._block_rows = min(max_block_rows, rows_needed)
        self._rows = _round_up(rows_needed, self._block_rows)

        self._shadow = self._pack(params)          # one-time pack (HBM copy)
        self._step_fn = self._build_step_fn()
        self._unpack_fn = self._build_unpack_fn()

    def _pack(self, params):
        pad = self._rows * LANES - self._total
        flat = [p.reshape(-1).astype(self._dtype) for p in params]
        if pad:
            flat.append(jnp.zeros((pad,), dtype=self._dtype))
        return jnp.concatenate(flat).reshape(self._rows, LANES)

    def _build_step_fn(self):
        mu = self.mu
        block_rows = self._block_rows
        rows = self._rows
        total = self._total
        dtype = self._dtype

        def step(shadow2d, new_params):
            pad = rows * LANES - total
            flat = [p.reshape(-1).astype(dtype) for p in new_params]
            if pad:
                flat.append(jnp.zeros((pad,), dtype=dtype))
            new2d = jnp.concatenate(flat).reshape(rows, LANES)
            return _ema_pallas(shadow2d, new2d, mu, block_rows)

        # Donate the shadow slab so the pallas input/output alias can reuse
        # the buffer (in-place update, like the PyTorch module).
        return jax.jit(step, donate_argnums=(0,))

    def _build_unpack_fn(self):
        offsets, sizes, shapes = self._offsets, self._sizes, self._shapes

        def unpack(shadow2d):
            flat = shadow2d.reshape(-1)
            return [jax.lax.dynamic_slice(flat, (o,), (s,)).reshape(shp)
                    for o, s, shp in zip(offsets, sizes, shapes)]

        return jax.jit(unpack)

    # ---- PyTorch `forward(new_params)` equivalent ---------------------------
    def forward(self, new_params):
        # In-place shadow update only; no per-parameter unpacking on the hot path
        # (matches the PyTorch module, whose forward returns nothing).
        self._shadow = self._step_fn(self._shadow, list(new_params))

    __call__ = forward

    # ---- PyTorch `shadow_vars()` equivalent ---------------------------------
    def shadow_vars(self):
        return self._unpack_fn(self._shadow)


if __name__ == "__main__":
    mu = 0.9
    key = jax.random.PRNGKey(0)

    # Small synthetic "registered" parameters (shapes a small CNN might have).
    param_shapes = [(4, 4, 3, 3), (4,), (10, 32)]
    keys = jax.random.split(key, 3 * len(param_shapes))

    init_params = [jax.random.normal(keys[3 * i], s, dtype=jnp.float32)
                   for i, s in enumerate(param_shapes)]
    new_params_1 = [jax.random.normal(keys[3 * i + 1], s, dtype=jnp.float32)
                    for i, s in enumerate(param_shapes)]
    new_params_2 = [jax.random.normal(keys[3 * i + 2], s, dtype=jnp.float32)
                    for i, s in enumerate(param_shapes)]

    ema = EMA(mu)
    ema.register(init_params)

    # Two EMA steps (also exercises the in-place/donated shadow path).
    ema.forward(new_params_1)
    ema.forward(new_params_2)
    updated = [jax.block_until_ready(u) for u in ema.shadow_vars()]

    # Reference check against plain JAX (two steps).
    ok = True
    for s0, p1, p2, u in zip(init_params, new_params_1, new_params_2, updated):
        ref = mu * s0 + (1.0 - mu) * p1
        ref = mu * ref + (1.0 - mu) * p2
        ok = ok and bool(jnp.allclose(u, ref, atol=1e-6, rtol=1e-6))
        ok = ok and (u.shape == s0.shape) and (u.dtype == s0.dtype)

    if ok:
        print("KERNEL_OK")
    else:
        print("MISMATCH")
</pallas_src>

<mosaic_0001>
module attributes {stable_mosaic.version = 11 : i64} {
  func.func @_ema_kernel(%arg0: i32, %arg1: memref<32x1024xf32, #tpu.memory_space<vmem>>, %arg2: memref<32x1024xf32, #tpu.memory_space<vmem>>, %arg3: memref<32x1024xf32, #tpu.memory_space<vmem>>) attributes {dimension_semantics = [#tpu.dimension_semantics<parallel>], iteration_bounds = array<i64: 1>, scalar_prefetch = 0 : i64, scratch_operands = 0 : i64, tpu.core_type = #tpu.core_type<tc>, window_params = [{transform_indices = @transform_0, window_bounds = array<i64: 32, 1024>}, {transform_indices = @transform_1, window_bounds = array<i64: 32, 1024>}, {transform_indices = @transform_2, window_bounds = array<i64: 32, 1024>}]} {
    %c0 = arith.constant 0 : index
    %c0_0 = arith.constant 0 : index
    %0 = vector.load %arg1[%c0, %c0_0] : memref<32x1024xf32, #tpu.memory_space<vmem>>, vector<32x1024xf32>
    %c0_1 = arith.constant 0 : index
    %c0_2 = arith.constant 0 : index
    %1 = vector.load %arg2[%c0_1, %c0_2] : memref<32x1024xf32, #tpu.memory_space<vmem>>, vector<32x1024xf32>
    %cst = arith.constant 0.899999976 : f32
    %2 = vector.broadcast %cst : f32 to vector<32x1024xf32>
    %3 = arith.mulf %2, %0 : vector<32x1024xf32>
    %cst_3 = arith.constant 1.000000e-01 : f32
    %4 = vector.broadcast %cst_3 : f32 to vector<32x1024xf32>
    %5 = arith.mulf %4, %1 : vector<32x1024xf32>
    %6 = arith.addf %3, %5 : vector<32x1024xf32>
    %c0_4 = arith.constant 0 : index
    %c0_5 = arith.constant 0 : index
    %7 = vector.load %arg3[%c0_4, %c0_5] : memref<32x1024xf32, #tpu.memory_space<vmem>>, vector<32x1024xf32>
    tpu.vector_store %arg3[%c0_4, %c0_5], %6 {strides = array<i32>} : memref<32x1024xf32, #tpu.memory_space<vmem>>, vector<32x1024xf32>,
    return
  }
  func.func @transform_0(%arg0: i32) -> (i32, i32) {
    %c0_i32 = arith.constant 0 : i32
    %c0_i32_0 = arith.constant 0 : i32
    return %arg0, %c0_i32 : i32, i32
  }
  func.func @transform_1(%arg0: i32) -> (i32, i32) {
    %c0_i32 = arith.constant 0 : i32
    %c0_i32_0 = arith.constant 0 : i32
    return %arg0, %c0_i32 : i32, i32
  }
  func.func @transform_2(%arg0: i32) -> (i32, i32) {
    %c0_i32 = arith.constant 0 : i32
    %c0_i32_0 = arith.constant 0 : i32
    return %arg0, %c0_i32 : i32, i32
  }
}

</mosaic_0001>

<bundles_post_ra>
// kernel: step.1
= control target key start
LH: loop header
LB: loop body
LE: loop exit
PB: predicated region body
PF: predicated region fallthrough
CT: control target
= control target key end

     0   :  { %7 = vsyncpa [#allocation3], 0  ;;  %s432_s0 = inlined_call_operand.hbm [shape: f32[32,1024], index: 0, kind: input, shape index: {}, may-alias: {0,2}]   ;;  %s433_s1 = inlined_call_operand.vmem [shape: f32[32,1024], index: 1, kind: input, shape index: {}]   ;;  %s434_s2 = inlined_call_operand.hbm [shape: f32[32,1024], index: 2, kind: output, shape index: {}, may-alias: {0,2}]  }
   0x1   :  { %8 = vsyncpa [#allocation4], 0  ;;  %s287_s9 = smov [#allocation2]   ;;  %s239_s13 = scalar_lea.hbm %s432_s0, 4096 }
   0x2   :  { %s14_s10 = sshll.u32 %s287_s9, 4  ;;  %p240_p0 = scmp.ne.s32.totalorder %s432_s0, %s239_s13  ;;  %s15_s10 = int_to_ptr.vmem [resolvable:$true] %s14_s10 }
   0x3   :  { %p243_p1 = scmp.lt.u32.totalorder %s239_s13, %s432_s0 }
   0x5   :  { %p245_p2 = pnand %p243_p1, %p240_p0 }
   0x7   :  { %248 = shalt.err (!%p245_p2)
}
   0x8   :  { %s249_s18 = scalar_lea.vmem %s15_s10, 4096  ;;  %p254_p4 = scmp.lt.s32.totalorder %s15_s10, %s15_s10 }
   0x9   :  { %p250_p3 = scmp.ne.s32.totalorder %s15_s10, %s249_s18  ;;  %p255_p5 = scmp.lt.s32.totalorder %s249_s18, %s249_s18 }
   0xb   :  { %p256_p6 = por %p255_p5, %p254_p4 }
   0xd   :  { %p257_p7 = pnand %p256_p6, %p250_p3 }
   0xf   :  { %260 = shalt.err (!%p257_p7)
}
  0x10   :  { %s288_s19 = smov 1024   ;;  %s289_s20 = smov 64  }
  0x11   :  { %20 = dma.hbm_to_vmem [thread:$0]  %s432_s0, 4096, %s15_s10, [#allocation3], %s288_s19, %s288_s19, %s289_s20  }
  0x12   :  { %283 = dma.done.wait [#allocation3], 4096  }
  0x13   :  { %284 = vsyncadd [#allocation3], 4294963200  ;;  %v26_v0 = vld [vmem:[#allocation2] sm:$0xff]  ;;  %v27_v2 = vld [vmem:[#allocation2 + $0x8] sm:$0xff]  ;;  %s290_s4 = smov [#allocation5]  }
  0x14   :  { %v58_v1 = vld [vmem:[%s433_s1] sm:$0xff]  ;;  %v90_v3 = vmul.f32 0.9, %v26_v0  ;;  %v59_v5 = vld [vmem:[%s433_s1 + $0x8] sm:$0xff]  ;;  %v28_v6 = vld [vmem:[#allocation2 + $0x10] sm:$0xff]  ;;  %s223_s5 = sshll.u32 %s290_s4, 4  ;;  %s224_s5 = int_to_ptr.vmem [resolvable:$true] %s223_s5 }
  0x15   :  { %v122_v4 = vmul.f32 0.1, %v58_v1  ;;  %v91_v7 = vmul.f32 0.9, %v27_v2  ;;  %v123_v8 = vmul.f32 0.1, %v59_v5  ;;  %p266_p9 = scmp.lt.s32.totalorder %s224_s5, %s224_s5 }
  0x16   :  { %v60_v9 = vld [vmem:[%s433_s1 + $0x10] sm:$0xff]  ;;  %v29_v10 = vld [vmem:[#allocation2 + $0x18] sm:$0xff]  ;;  %v92_v12 = vmul.f32 0.9, %v28_v6  ;;  %v30_v15 = vld [vmem:[#allocation2 + $0x20] sm:$0xff]  ;;  %s261_s6 = scalar_lea.vmem %s224_s5, 4096 }
  0x17   :  { %v154_v11 = vadd.f32 %v122_v4, %v90_v3  ;;  %v124_v13 = vmul.f32 0.1, %v60_v9  ;;  %v61_v14 = vld [vmem:[%s433_s1 + $0x18] sm:$0xff]  ;;  %v155_v16 = vadd.f32 %v123_v8, %v91_v7  ;;  %v93_v17 = vmul.f32 0.9, %v29_v10  ;;  %v62_v19 = vld [vmem:[%s433_s1 + $0x20] sm:$0xff]  ;;  %p262_p8 = scmp.ne.s32.totalorder %s224_s5, %s261_s6  ;;  %p267_p10 = scmp.lt.s32.totalorder %s261_s6, %s261_s6 }
  0x18   :  { %v125_v18 = vmul.f32 0.1, %v61_v14  ;;  %v31_v20 = vld [vmem:[#allocation2 + $0x28] sm:$0xff]  ;;  %v94_v22 = vmul.f32 0.9, %v30_v15  ;;  %v32_v25 = vld [vmem:[#allocation2 + $0x30] sm:$0xff] }
  0x19   :  { %186 = vst [vmem:[#allocation5] sm:$0xff] %v154_v11  ;;  %v156_v21 = vadd.f32 %v124_v13, %v92_v12  ;;  %v126_v23 = vmul.f32 0.1, %v62_v19  ;;  %v63_v24 = vld [vmem:[%s433_s1 + $0x28] sm:$0xff]  ;;  %187 = vst [vmem:[#allocation5 + $0x8] sm:$0xff] %v155_v16  ;;  %v64_v29 = vld [vmem:[%s433_s1 + $0x30] sm:$0xff]  ;;  %p268_p11 = por %p267_p10, %p266_p9 }
  0x1a   :  { %v157_v26 = vadd.f32 %v125_v18, %v93_v17  ;;  %v95_v27 = vmul.f32 0.9, %v31_v20  ;;  %v127_v28 = vmul.f32 0.1, %v63_v24  ;;  %v33_v30 = vld [vmem:[#allocation2 + $0x38] sm:$0xff]  ;;  %v34_v35 = vld [vmem:[#allocation2 + $0x40] sm:$0xff] }
  0x1b   :  { %188 = vst [vmem:[#allocation5 + $0x10] sm:$0xff] %v156_v21  ;;  %v158_v31 = vadd.f32 %v126_v23, %v94_v22  ;;  %v96_v32 = vmul.f32 0.9, %v32_v25  ;;  %v128_v33 = vmul.f32 0.1, %v64_v29  ;;  %v65_v34 = vld [vmem:[%s433_s1 + $0x38] sm:$0xff]  ;;  %p269_p12 = pnand %p268_p11, %p262_p8 }
  0x1c   :  { %189 = vst [vmem:[#allocation5 + $0x18] sm:$0xff] %v157_v26  ;;  %v159_v36 = vadd.f32 %v127_v28, %v95_v27  ;;  %v97_v37 = vmul.f32 0.9, %v33_v30  ;;  %v129_v38 = vmul.f32 0.1, %v65_v34  ;;  %v66_v39 = vld [vmem:[%s433_s1 + $0x40] sm:$0xff] }
  0x1d   :  { %v35_v40 = vld [vmem:[#allocation2 + $0x48] sm:$0xff]  ;;  %190 = vst [vmem:[#allocation5 + $0x20] sm:$0xff] %v158_v31  ;;  %v160_v41 = vadd.f32 %v128_v33, %v96_v32  ;;  %v98_v42 = vmul.f32 0.9, %v34_v35  ;;  %v130_v43 = vmul.f32 0.1, %v66_v39 }
  0x1e   :  { %v67_v44 = vld [vmem:[%s433_s1 + $0x48] sm:$0xff]  ;;  %v36_v45 = vld [vmem:[#allocation2 + $0x50] sm:$0xff]  ;;  %191 = vst [vmem:[#allocation5 + $0x28] sm:$0xff] %v159_v36  ;;  %v161_v46 = vadd.f32 %v129_v38, %v97_v37  ;;  %v99_v47 = vmul.f32 0.9, %v35_v40  ;;  %v37_v50 = vld [vmem:[#allocation2 + $0x58] sm:$0xff] }
  0x1f   :  { %v131_v48 = vmul.f32 0.1, %v67_v44  ;;  %v68_v49 = vld [vmem:[%s433_s1 + $0x50] sm:$0xff]  ;;  %192 = vst [vmem:[#allocation5 + $0x30] sm:$0xff] %v160_v41  ;;  %v162_v51 = vadd.f32 %v130_v43, %v98_v42  ;;  %v100_v52 = vmul.f32 0.9, %v36_v45 }
  0x20   :  { %v132_v53 = vmul.f32 0.1, %v68_v49  ;;  %v69_v54 = vld [vmem:[%s433_s1 + $0x58] sm:$0xff]  ;;  %v38_v55 = vld [vmem:[#allocation2 + $0x60] sm:$0xff]  ;;  %193 = vst [vmem:[#allocation5 + $0x38] sm:$0xff] %v161_v46  ;;  %v39_v60 = vld [vmem:[#allocation2 + $0x68] sm:$0xff] }
  0x21   :  { %v163_v56 = vadd.f32 %v131_v48, %v99_v47  ;;  %v101_v57 = vmul.f32 0.9, %v37_v50  ;;  %v133_v58 = vmul.f32 0.1, %v69_v54  ;;  %v70_v59 = vld [vmem:[%s433_s1 + $0x60] sm:$0xff]  ;;  %194 = vst [vmem:[#allocation5 + $0x40] sm:$0xff] %v162_v51 }
  0x22   :  { %v164_v61 = vadd.f32 %v132_v53, %v100_v52  ;;  %v102_v62 = vmul.f32 0.9, %v38_v55  ;;  %v134_v63 = vmul.f32 0.1, %v70_v59  ;;  %v71_v0 = vld [vmem:[%s433_s1 + $0x68] sm:$0xff]  ;;  %v40_v1 = vld [vmem:[#allocation2 + $0x70] sm:$0xff] }
  0x23   :  { %195 = vst [vmem:[#allocation5 + $0x48] sm:$0xff] %v163_v56  ;;  %v165_v2 = vadd.f32 %v133_v58, %v101_v57  ;;  %v103_v3 = vmul.f32 0.9, %v39_v60  ;;  %v135_v4 = vmul.f32 0.1, %v71_v0  ;;  %v72_v5 = vld [vmem:[%s433_s1 + $0x70] sm:$0xff] }
  0x24   :  { %v41_v6 = vld [vmem:[#allocation2 + $0x78] sm:$0xff]  ;;  %196 = vst [vmem:[#allocation5 + $0x50] sm:$0xff] %v164_v61  ;;  %v166_v7 = vadd.f32 %v134_v63, %v102_v62  ;;  %v104_v8 = vmul.f32 0.9, %v40_v1  ;;  %v136_v9 = vmul.f32 0.1, %v72_v5 }
  0x25   :  { %v73_v10 = vld [vmem:[%s433_s1 + $0x78] sm:$0xff]  ;;  %v42_v11 = vld [vmem:[#allocation2 + $0x80] sm:$0xff]  ;;  %197 = vst [vmem:[#allocation5 + $0x58] sm:$0xff] %v165_v2  ;;  %v167_v12 = vadd.f32 %v135_v4, %v103_v3  ;;  %v105_v13 = vmul.f32 0.9, %v41_v6  ;;  %v43_v16 = vld [vmem:[#allocation2 + $0x88] sm:$0xff] }
  0x26   :  { %v137_v14 = vmul.f32 0.1, %v73_v10  ;;  %v74_v15 = vld [vmem:[%s433_s1 + $0x80] sm:$0xff]  ;;  %198 = vst [vmem:[#allocation5 + $0x60] sm:$0xff] %v166_v7  ;;  %v168_v17 = vadd.f32 %v136_v9, %v104_v8  ;;  %v106_v18 = vmul.f32 0.9, %v42_v11 }
  0x27   :  { %v138_v19 = vmul.f32 0.1, %v74_v15  ;;  %v75_v20 = vld [vmem:[%s433_s1 + $0x88] sm:$0xff]  ;;  %v44_v21 = vld [vmem:[#allocation2 + $0x90] sm:$0xff]  ;;  %199 = vst [vmem:[#allocation5 + $0x68] sm:$0xff] %v167_v12  ;;  %v45_v26 = vld [vmem:[#allocation2 + $0x98] sm:$0xff] }
  0x28   :  { %v169_v22 = vadd.f32 %v137_v14, %v105_v13  ;;  %v107_v23 = vmul.f32 0.9, %v43_v16  ;;  %v139_v24 = vmul.f32 0.1, %v75_v20  ;;  %v76_v25 = vld [vmem:[%s433_s1 + $0x90] sm:$0xff]  ;;  %200 = vst [vmem:[#allocation5 + $0x70] sm:$0xff] %v168_v17 }
  0x29   :  { %v170_v27 = vadd.f32 %v138_v19, %v106_v18  ;;  %v108_v28 = vmul.f32 0.9, %v44_v21  ;;  %v140_v29 = vmul.f32 0.1, %v76_v25  ;;  %v77_v30 = vld [vmem:[%s433_s1 + $0x98] sm:$0xff]  ;;  %v46_v31 = vld [vmem:[#allocation2 + $0xa0] sm:$0xff] }
  0x2a   :  { %201 = vst [vmem:[#allocation5 + $0x78] sm:$0xff] %v169_v22  ;;  %v171_v32 = vadd.f32 %v139_v24, %v107_v23  ;;  %v109_v33 = vmul.f32 0.9, %v45_v26  ;;  %v141_v34 = vmul.f32 0.1, %v77_v30  ;;  %v78_v35 = vld [vmem:[%s433_s1 + $0xa0] sm:$0xff] }
  0x2b   :  { %v47_v36 = vld [vmem:[#allocation2 + $0xa8] sm:$0xff]  ;;  %202 = vst [vmem:[#allocation5 + $0x80] sm:$0xff] %v170_v27  ;;  %v172_v37 = vadd.f32 %v140_v29, %v108_v28  ;;  %v110_v38 = vmul.f32 0.9, %v46_v31  ;;  %v142_v39 = vmul.f32 0.1, %v78_v35 }
  0x2c   :  { %v79_v40 = vld [vmem:[%s433_s1 + $0xa8] sm:$0xff]  ;;  %v48_v41 = vld [vmem:[#allocation2 + $0xb0] sm:$0xff]  ;;  %203 = vst [vmem:[#allocation5 + $0x88] sm:$0xff] %v171_v32  ;;  %v173_v42 = vadd.f32 %v141_v34, %v109_v33  ;;  %v111_v43 = vmul.f32 0.9, %v47_v36  ;;  %v49_v46 = vld [vmem:[#allocation2 + $0xb8] sm:$0xff] }
  0x2d   :  { %v143_v44 = vmul.f32 0.1, %v79_v40  ;;  %v80_v45 = vld [vmem:[%s433_s1 + $0xb0] sm:$0xff]  ;;  %204 = vst [vmem:[#allocation5 + $0x90] sm:$0xff] %v172_v37  ;;  %v174_v47 = vadd.f32 %v142_v39, %v110_v38  ;;  %v112_v48 = vmul.f32 0.9, %v48_v41 }
  0x2e   :  { %v144_v49 = vmul.f32 0.1, %v80_v45  ;;  %v81_v50 = vld [vmem:[%s433_s1 + $0xb8] sm:$0xff]  ;;  %v50_v51 = vld [vmem:[#allocation2 + $0xc0] sm:$0xff]  ;;  %205 = vst [vmem:[#allocation5 + $0x98] sm:$0xff] %v173_v42  ;;  %v51_v56 = vld [vmem:[#allocation2 + $0xc8] sm:$0xff] }
  0x2f   :  { %v175_v52 = vadd.f32 %v143_v44, %v111_v43  ;;  %v113_v53 = vmul.f32 0.9, %v49_v46  ;;  %v145_v54 = vmul.f32 0.1, %v81_v50  ;;  %v82_v55 = vld [vmem:[%s433_s1 + $0xc0] sm:$0xff]  ;;  %206 = vst [vmem:[#allocation5 + $0xa0] sm:$0xff] %v174_v47 }
  0x30   :  { %v176_v57 = vadd.f32 %v144_v49, %v112_v48  ;;  %v114_v58 = vmul.f32 0.9, %v50_v51  ;;  %v146_v59 = vmul.f32 0.1, %v82_v55  ;;  %v83_v60 = vld [vmem:[%s433_s1 + $0xc8] sm:$0xff]  ;;  %v52_v61 = vld [vmem:[#allocation2 + $0xd0] sm:$0xff] }
  0x31   :  { %207 = vst [vmem:[#allocation5 + $0xa8] sm:$0xff] %v175_v52  ;;  %v177_v62 = vadd.f32 %v145_v54, %v113_v53  ;;  %v115_v63 = vmul.f32 0.9, %v51_v56  ;;  %v147_v0 = vmul.f32 0.1, %v83_v60  ;;  %v84_v1 = vld [vmem:[%s433_s1 + $0xd0] sm:$0xff] }
  0x32   :  { %v53_v2 = vld [vmem:[#allocation2 + $0xd8] sm:$0xff]  ;;  %208 = vst [vmem:[#allocation5 + $0xb0] sm:$0xff] %v176_v57  ;;  %v178_v3 = vadd.f32 %v146_v59, %v114_v58  ;;  %v116_v4 = vmul.f32 0.9, %v52_v61  ;;  %v148_v5 = vmul.f32 0.1, %v84_v1 }
  0x33   :  { %v85_v6 = vld [vmem:[%s433_s1 + $0xd8] sm:$0xff]  ;;  %v54_v7 = vld [vmem:[#allocation2 + $0xe0] sm:$0xff]  ;;  %209 = vst [vmem:[#allocation5 + $0xb8] sm:$0xff] %v177_v62  ;;  %v179_v8 = vadd.f32 %v147_v0, %v115_v63  ;;  %v117_v9 = vmul.f32 0.9, %v53_v2  ;;  %v55_v12 = vld [vmem:[#allocation2 + $0xe8] sm:$0xff] }
  0x34   :  { %v149_v10 = vmul.f32 0.1, %v85_v6  ;;  %v86_v11 = vld [vmem:[%s433_s1 + $0xe0] sm:$0xff]  ;;  %210 = vst [vmem:[#allocation5 + $0xc0] sm:$0xff] %v178_v3  ;;  %v180_v13 = vadd.f32 %v148_v5, %v116_v4  ;;  %v118_v14 = vmul.f32 0.9, %v54_v7 }
  0x35   :  { %v150_v15 = vmul.f32 0.1, %v86_v11  ;;  %v87_v16 = vld [vmem:[%s433_s1 + $0xe8] sm:$0xff]  ;;  %v56_v17 = vld [vmem:[#allocation2 + $0xf0] sm:$0xff]  ;;  %211 = vst [vmem:[#allocation5 + $0xc8] sm:$0xff] %v179_v8  ;;  %v57_v22 = vld [vmem:[#allocation2 + $0xf8] sm:$0xff] }
  0x36   :  { %v181_v18 = vadd.f32 %v149_v10, %v117_v9  ;;  %v119_v19 = vmul.f32 0.9, %v55_v12  ;;  %v151_v20 = vmul.f32 0.1, %v87_v16  ;;  %v88_v21 = vld [vmem:[%s433_s1 + $0xf0] sm:$0xff]  ;;  %212 = vst [vmem:[#allocation5 + $0xd0] sm:$0xff] %v180_v13 }
  0x37   :  { %v182_v23 = vadd.f32 %v150_v15, %v118_v14  ;;  %v120_v24 = vmul.f32 0.9, %v56_v17  ;;  %v152_v25 = vmul.f32 0.1, %v88_v21  ;;  %v89_v26 = vld [vmem:[%s433_s1 + $0xf8] sm:$0xff] }
  0x38   :  { %213 = vst [vmem:[#allocation5 + $0xd8] sm:$0xff] %v181_v18  ;;  %v183_v27 = vadd.f32 %v151_v20, %v119_v19  ;;  %v121_v28 = vmul.f32 0.9, %v57_v22  ;;  %v153_v29 = vmul.f32 0.1, %v89_v26 }
  0x39   :  { %214 = vst [vmem:[#allocation5 + $0xe0] sm:$0xff] %v182_v23  ;;  %v184_v30 = vadd.f32 %v152_v25, %v120_v24 }
  0x3a   :  { %215 = vst [vmem:[#allocation5 + $0xe8] sm:$0xff] %v183_v27  ;;  %v185_v31 = vadd.f32 %v153_v29, %v121_v28 }
  0x3b   :  { %216 = vst [vmem:[#allocation5 + $0xf0] sm:$0xff] %v184_v30 }
  0x3c   :  { %217 = vst [vmem:[#allocation5 + $0xf8] sm:$0xff] %v185_v31 }
  0x3d   :  { %272 = shalt.err (!%p269_p12)
}
  0x3e   :  { %s273_s8 = scalar_lea.hbm %s434_s2, 4096 }
  0x3f   :  { %p274_p13 = scmp.ne.s32.totalorder %s434_s2, %s273_s8  ;;  %p277_p0 = scmp.lt.u32.totalorder %s273_s8, %s434_s2 }
  0x41   :  { %p279_p1 = pnand %p277_p0, %p274_p13 }
  0x43   :  { %282 = shalt.err (!%p279_p1)
}
  0x44   :  { %229 = dma.vmem_to_hbm [thread:$0]  %s224_s5, 4096, %s434_s2, [#allocation4], %s288_s19, %s288_s19, %s289_s20  }
  0x45   :  { %285 = dma.done.wait [#allocation4], 4096  }
  0x46   :  { %286 = vsyncadd [#allocation4], 4294963200 }
  0x47   :  { %233 = vsyncpa [#allocation3], 1 }
  0x48   :  { %234 = vsyncpa [#allocation4], 1 }

</bundles_post_ra>
